<compile_context>
chip_gen: v7x
topology: tpu7x:2x2x1
jax: 0.10.0
libtpu: 0.0.40
codegen_flags: <defaults>
</compile_context>

<pallas_src>
from functools import partial

import jax
import jax.numpy as jnp
import numpy as np
from jax import lax
from jax.experimental import pallas as pl
from jax.experimental.pallas import tpu as pltpu

LANES = 128
SUBLANES = 8
MAX_TILE_ROWS = 4096      # 4096 x 128 x 4 B = 2 MiB per f32 block
PAD_LOGIT = -1e9          # exp(-|x|)=0, sigmoid=0, softplus=0 -> zero contribution


def _num_tensorcores():
    """Best-effort TensorCores-per-chip (2 on v7x); falls back to 1 (safe)."""
    try:
        info = pltpu.get_tpu_info()
    except Exception:
        return 1
    for attr in ("num_cores", "core_count", "num_tensorcores",
                 "tensorcores_per_chip", "cores_per_chip"):
        v = getattr(info, attr, None)
        try:
            v = int(v)
        except (TypeError, ValueError):
            continue
        if v > 0:
            return v
    return 1


def _mixed_loss_kernel(x_ref, t_ref, o_ref, acc_ref, *,
                       valid_rows, gamma, tile_rows, steps, need_mask,
                       binary_target):
    j = pl.program_id(1)

    @pl.when(j == 0)
    def _():
        acc_ref[...] = jnp.zeros_like(acc_ref)

    x = x_ref[...].astype(jnp.float32)
    t = t_ref[...].astype(jnp.float32)

    # ---- elementwise pieces, minimized EUP usage (~3 EUP pushes / element) --
    # stable BCE-with-logits: softplus(x) - x*t, reusing e_x = exp(-|x|)
    e_x = jnp.exp(-jnp.abs(x))
    inv_one_p_ex = pl.reciprocal(1.0 + e_x, approx=True)      # single vrcp
    bce = jnp.maximum(x, 0.0) + jnp.log(1.0 + e_x) - x * t
    sig_x = jnp.where(x >= 0.0, 1.0, e_x) * inv_one_p_ex      # sigmoid(x)

    g = float(gamma)
    if binary_target:
        # t in {0,1}: z = x*(1-2t) has |z| == |x|, so sigmoid(z) is a select
        # on sigmoid(x) -- no second exp and no second reciprocal.
        sig_z = jnp.where(t > 0.5, 1.0 - sig_x, sig_x)
        if g.is_integer() and 0.0 <= g <= 8.0:
            w = jnp.ones_like(sig_z)
            for _ in range(int(g)):
                w = w * sig_z                                  # sigmoid(z)**gamma
        else:
            # logsigmoid(z) = min(z,0) - log(1+exp(-|z|)), with |z| == |x|
            logsig_z = (jnp.where(t > 0.5, -jnp.maximum(x, 0.0), jnp.minimum(x, 0.0))
                        - jnp.log(1.0 + e_x))
            w = jnp.exp(g * logsig_z)
    else:
        z = x * (1.0 - 2.0 * t)
        e_z = jnp.exp(-jnp.abs(z))
        if g.is_integer() and 0.0 <= g <= 8.0:
            sig_z = jnp.where(z >= 0.0, 1.0, e_z) * pl.reciprocal(1.0 + e_z,
                                                                  approx=True)
            w = jnp.ones_like(sig_z)
            for _ in range(int(g)):
                w = w * sig_z
        else:
            logsig_z = jnp.minimum(z, 0.0) - jnp.log(1.0 + e_z)
            w = jnp.exp(g * logsig_z)
    focal = w * bce

    n_sub = tile_rows // SUBLANES

    def accumulate(focal_v, sig_v, t_v):
        # Pure VPU vreg adds into per-lane partial sums; no per-step XLU reduce.
        acc_ref[0] += jnp.sum(focal_v.reshape(n_sub, SUBLANES, LANES), axis=0)
        acc_ref[1] += jnp.sum((sig_v * t_v).reshape(n_sub, SUBLANES, LANES), axis=0)
        acc_ref[2] += jnp.sum((sig_v + t_v).reshape(n_sub, SUBLANES, LANES), axis=0)

    if need_mask:
        # Only blocks that overrun the (rows, 128) slab pay the mask; padding
        # inside the slab already contributes exactly zero (PAD_LOGIT trick).
        gb = pl.program_id(0) * steps + j                      # logical block idx
        block_end = (gb + 1) * tile_rows

        @pl.when(block_end <= valid_rows)
        def _():
            accumulate(focal, sig_x, t)

        @pl.when(block_end > valid_rows)
        def _():
            # Single row-index iota; keep jnp.where (select) so OOB garbage
            # (Inf/NaN) in the unread tail of the VMEM buffer cannot propagate.
            r = lax.broadcasted_iota(jnp.int32, (tile_rows, LANES), 0)
            m = (gb * tile_rows + r) < valid_rows
            accumulate(jnp.where(m, focal, 0.0),
                       jnp.where(m, sig_x, 0.0),
                       jnp.where(m, t, 0.0))
    else:
        accumulate(focal, sig_x, t)

    @pl.when(j == pl.num_programs(1) - 1)
    def _():
        o_ref[...] = acc_ref[...]


def mixed_loss(x, target, *, alpha, gamma, binary_target=True,
               max_tile_rows=MAX_TILE_ROWS):
    """Pallas implementation of MixedLoss.forward. Returns a scalar f32.

    binary_target=True assumes hard {0,1} labels (exact in bf16 and enables
    the sigmoid-reuse fast path); pass False for soft labels.
    max_tile_rows must be a multiple of 16.
    """
    n = int(np.prod(x.shape))
    xf = x.reshape(-1)                                      # keep HBM dtype of x
    t_dtype = jnp.bfloat16 if binary_target else jnp.float32
    tf = target.reshape(-1).astype(t_dtype)

    # Pad to a multiple of 16*128 elements so both f32 (8,128) and bf16
    # (16,128) min tiles are satisfied.  Padded logits/targets contribute
    # exactly zero to every accumulated stream, so no in-kernel mask is
    # needed for this padding.
    sub_chunk = 2 * SUBLANES * LANES
    n_pad = pl.cdiv(n, sub_chunk) * sub_chunk
    if n_pad != n:
        xf = jnp.pad(xf, (0, n_pad - n), constant_values=PAD_LOGIT)
        tf = jnp.pad(tf, (0, n_pad - n), constant_values=0)

    rows = n_pad // LANES
    x2 = xf.reshape(rows, LANES)
    t2 = tf.reshape(rows, LANES)

    tile_rows = min(max_tile_rows, rows)          # multiple of 16 by construction
    total_blocks = pl.cdiv(rows, tile_rows)

    # Split the leading grid axis across TensorCores only on multi-TC chips
    # (v7x); on v5e/v6e this stays 1 and adds zero overhead.
    n_cores = _num_tensorcores()
    num_split = n_cores if (n_cores > 1 and total_blocks >= n_cores) else 1
    steps = pl.cdiv(total_blocks, num_split)
    need_mask = (num_split * steps * tile_rows) != rows

    def in_map(s, j):
        # Clamp so overshoot blocks (block counts not divisible by num_split)
        # stay in-bounds; their contribution is zeroed by the row mask.
        return (jnp.minimum(s * steps + j, total_blocks - 1), 0)

    kernel = partial(_mixed_loss_kernel, valid_rows=rows, gamma=float(gamma),
                     tile_rows=tile_rows, steps=steps, need_mask=need_mask,
                     binary_target=binary_target)

    if num_split > 1:
        # Per-core VMEM scratch and per-s output blocks keep cores independent.
        dim_sem = (pltpu.CORE_PARALLEL, pltpu.ARBITRARY)
    else:
        dim_sem = (pltpu.PARALLEL, pltpu.ARBITRARY)

    partials = pl.pallas_call(
        kernel,
        out_shape=jax.ShapeDtypeStruct((num_split * 3, SUBLANES, LANES),
                                       jnp.float32),
        grid_spec=pltpu.PrefetchScalarGridSpec(
            num_scalar_prefetch=0,
            grid=(num_split, steps),
            in_specs=[
                pl.BlockSpec((tile_rows, LANES), in_map),
                pl.BlockSpec((tile_rows, LANES), in_map),
            ],
            out_specs=pl.BlockSpec((3, SUBLANES, LANES), lambda s, j: (s, 0, 0)),
            scratch_shapes=[pltpu.VMEM((3, SUBLANES, LANES), jnp.float32)],
        ),
        compiler_params=pltpu.CompilerParams(dimension_semantics=dim_sem),
    )(x2, t2)

    # Final cross-lane / cross-core reduce + scalar math (tiny) in plain JAX.
    sums = partials.reshape(num_split, 3, SUBLANES, LANES).sum(axis=(0, 2, 3))
    smooth = 1.0
    focal_mean = sums[0] / jnp.float32(n)
    dice = (2.0 * sums[1] + smooth) / (sums[2] + smooth)
    return alpha * focal_mean - jnp.log(dice)


def _reference_mixed_loss(x, t, alpha, gamma):
    """Pure-JAX reference mirroring the PyTorch module."""
    xs = jax.nn.sigmoid(x).reshape(-1)
    ts = t.reshape(-1)
    smooth = 1.0
    inter = jnp.sum(xs * ts)
    dice = (2.0 * inter + smooth) / (jnp.sum(xs) + jnp.sum(ts) + smooth)
    max_val = jnp.maximum(-x, 0.0)
    bce = x - x * t + max_val + jnp.log(jnp.exp(-max_val) + jnp.exp(-x - max_val))
    invprobs = jax.nn.log_sigmoid(-x * (t * 2.0 - 1.0))
    focal = jnp.mean(jnp.exp(invprobs * gamma) * bce)
    return alpha * focal - jnp.log(dice)


if __name__ == "__main__":
    ALPHA = 10.0
    GAMMA = 2.0
    # Tolerance accounts for pl.reciprocal(approx=True) (single EUP vrcp,
    # ~1e-3 relative) amplified by alpha; real bugs show up as O(0.1+) errors.
    RTOL = ATOL = 2e-2

    key = jax.random.PRNGKey(0)
    kx, kt = jax.random.split(key)

    def check(shape, gamma, binary_target=True, max_tile_rows=MAX_TILE_ROWS):
        xs = jax.random.normal(kx, shape, dtype=jnp.float32)
        ts = (jax.random.uniform(kt, shape) > 0.5).astype(jnp.float32)
        got = jax.block_until_ready(
            mixed_loss(xs, ts, alpha=ALPHA, gamma=gamma,
                       binary_target=binary_target, max_tile_rows=max_tile_rows))
        ref = jax.block_until_ready(_reference_mixed_loss(xs, ts, ALPHA, gamma))
        assert np.allclose(np.asarray(got), np.asarray(ref),
                           rtol=RTOL, atol=ATOL), (
            f"mismatch shape={shape} gamma={gamma} binary={binary_target}: "
            f"pallas={got} ref={ref}")

    # 1) aligned element count, integer gamma, binary fast path
    check((2, 4, 16, 16), GAMMA)
    # 2) non-aligned element count -> exercises host-side zero-contribution pad
    check((2, 3, 16, 16), GAMMA)
    # 3) multi-block grid with an overrunning tail block -> row-mask path
    check((5, 4, 16, 16), GAMMA, max_tile_rows=32)
    # 4) non-integer gamma + general (non-binary-target) path
    check((2, 4, 16, 16), 1.5, binary_target=False)

    print("KERNEL_OK")
</pallas_src>

<mosaic_0001>
module attributes {stable_mosaic.version = 11 : i64} {
  func.func @_mixed_loss_kernel(%arg0: i32, %arg1: i32, %arg2: memref<16x128xf32, #tpu.memory_space<vmem>>, %arg3: memref<16x128xbf16, #tpu.memory_space<vmem>>, %arg4: memref<3x8x128xf32, #tpu.memory_space<vmem>>, %arg5: memref<3x8x128xf32, #tpu.memory_space<vmem>>) attributes {dimension_semantics = [#tpu.dimension_semantics<parallel>, #tpu.dimension_semantics<arbitrary>], iteration_bounds = array<i64: 1, 1>, scalar_prefetch = 0 : i64, scratch_operands = 1 : i64, tpu.core_type = #tpu.core_type<tc>, window_params = [{transform_indices = @transform_0, window_bounds = array<i64: 16, 128>}, {transform_indices = @transform_1, window_bounds = array<i64: 16, 128>}, {transform_indices = @transform_2, window_bounds = array<i64: 3, 8, 128>}]} {
    %c0_i32 = arith.constant 0 : i32
    %0 = arith.cmpi eq, %arg1, %c0_i32 : i32
    %1 = arith.extui %0 : i1 to i32
    %c0_i32_0 = arith.constant 0 : i32
    %2 = arith.cmpi ne, %1, %c0_i32_0 : i32
    scf.if %2 {
      %cst_33 = arith.constant 0.000000e+00 : f32
      %64 = vector.broadcast %cst_33 : f32 to vector<3x8x128xf32>
      %c0_34 = arith.constant 0 : index
      %c0_35 = arith.constant 0 : index
      %c0_36 = arith.constant 0 : index
      %65 = vector.load %arg5[%c0_34, %c0_35, %c0_36] : memref<3x8x128xf32, #tpu.memory_space<vmem>>, vector<3x8x128xf32>
      tpu.vector_store %arg5[%c0_34, %c0_35, %c0_36], %64 {strides = array<i32>} : memref<3x8x128xf32, #tpu.memory_space<vmem>>, vector<3x8x128xf32>,
    } else {
    }
    %c0 = arith.constant 0 : index
    %c0_1 = arith.constant 0 : index
    %3 = vector.load %arg2[%c0, %c0_1] : memref<16x128xf32, #tpu.memory_space<vmem>>, vector<16x128xf32>
    %c0_2 = arith.constant 0 : index
    %c0_3 = arith.constant 0 : index
    %4 = vector.load %arg3[%c0_2, %c0_3] : memref<16x128xbf16, #tpu.memory_space<vmem>>, vector<16x128xbf16>
    %5 = arith.extf %4 : vector<16x128xbf16> to vector<16x128xf32>
    %6 = math.absf %3 : vector<16x128xf32>
    %cst = arith.constant 0.000000e+00 : f32
    %7 = vector.broadcast %cst : f32 to vector<16x128xf32>
    %8 = arith.subf %7, %6 : vector<16x128xf32>
    %9 = math.exp %8 : vector<16x128xf32>
    %cst_4 = arith.constant 1.000000e+00 : f32
    %10 = vector.broadcast %cst_4 : f32 to vector<16x128xf32>
    %11 = arith.addf %10, %9 : vector<16x128xf32>
    %12 = tpu.reciprocal %11 {approx = true} : vector<16x128xf32> -> vector<16x128xf32>
    %cst_5 = arith.constant 0.000000e+00 : f32
    %13 = vector.broadcast %cst_5 : f32 to vector<16x128xf32>
    %14 = arith.maximumf %3, %13 : vector<16x128xf32>
    %cst_6 = arith.constant 1.000000e+00 : f32
    %15 = vector.broadcast %cst_6 : f32 to vector<16x128xf32>
    %16 = arith.addf %15, %9 : vector<16x128xf32>
    %17 = math.log %16 : vector<16x128xf32>
    %18 = arith.addf %14, %17 : vector<16x128xf32>
    %19 = arith.mulf %3, %5 : vector<16x128xf32>
    %20 = arith.subf %18, %19 : vector<16x128xf32>
    %cst_7 = arith.constant 0.000000e+00 : f32
    %21 = vector.broadcast %cst_7 : f32 to vector<16x128xf32>
    %22 = arith.cmpf oge, %3, %21 : vector<16x128xf32>
    %cst_8 = arith.constant 1.000000e+00 : f32
    %23 = vector.broadcast %cst_8 : f32 to vector<16x128xf32>
    %24 = arith.select %22, %23, %9 : vector<16x128xi1>, vector<16x128xf32>
    %25 = arith.mulf %24, %12 : vector<16x128xf32>
    %cst_9 = arith.constant 5.000000e-01 : f32
    %26 = vector.broadcast %cst_9 : f32 to vector<16x128xf32>
    %27 = arith.cmpf ogt, %5, %26 : vector<16x128xf32>
    %cst_10 = arith.constant 1.000000e+00 : f32
    %28 = vector.broadcast %cst_10 : f32 to vector<16x128xf32>
    %29 = arith.subf %28, %25 : vector<16x128xf32>
    %30 = arith.select %27, %29, %25 : vector<16x128xi1>, vector<16x128xf32>
    %cst_11 = arith.constant 1.000000e+00 : f32
    %31 = vector.broadcast %cst_11 : f32 to vector<16x128xf32>
    %32 = arith.mulf %31, %30 : vector<16x128xf32>
    %33 = arith.mulf %32, %30 : vector<16x128xf32>
    %34 = arith.mulf %33, %20 : vector<16x128xf32>
    %c0_12 = arith.constant 0 : index
    %c0_13 = arith.constant 0 : index
    %c0_14 = arith.constant 0 : index
    %35 = vector.load %arg5[%c0_12, %c0_13, %c0_14] : memref<3x8x128xf32, #tpu.memory_space<vmem>>, vector<1x8x128xf32>
    %36 = vector.shape_cast %35 : vector<1x8x128xf32> to vector<8x128xf32>
    %37 = vector.shape_cast %34 : vector<16x128xf32> to vector<2x8x128xf32>
    %cst_15 = arith.constant dense<0.000000e+00> : vector<8x128xf32>
    %38 = vector.multi_reduction <add>, %37, %cst_15 [0] : vector<2x8x128xf32> to vector<8x128xf32>
    %39 = arith.addf %36, %38 : vector<8x128xf32>
    %c0_16 = arith.constant 0 : index
    %c0_17 = arith.constant 0 : index
    %c0_18 = arith.constant 0 : index
    %40 = vector.load %arg5[%c0_16, %c0_17, %c0_18] : memref<3x8x128xf32, #tpu.memory_space<vmem>>, vector<1x8x128xf32>
    %41 = vector.shape_cast %40 : vector<1x8x128xf32> to vector<8x128xf32>
    %42 = vector.shape_cast %39 : vector<8x128xf32> to vector<1x8x128xf32>
    tpu.vector_store %arg5[%c0_16, %c0_17, %c0_18], %42 {strides = array<i32>} : memref<3x8x128xf32, #tpu.memory_space<vmem>>, vector<1x8x128xf32>,
    %c1 = arith.constant 1 : index
    %c0_19 = arith.constant 0 : index
    %c0_20 = arith.constant 0 : index
    %43 = vector.load %arg5[%c1, %c0_19, %c0_20] : memref<3x8x128xf32, #tpu.memory_space<vmem>>, vector<1x8x128xf32>
    %44 = vector.shape_cast %43 : vector<1x8x128xf32> to vector<8x128xf32>
    %45 = arith.mulf %25, %5 : vector<16x128xf32>
    %46 = vector.shape_cast %45 : vector<16x128xf32> to vector<2x8x128xf32>
    %cst_21 = arith.constant dense<0.000000e+00> : vector<8x128xf32>
    %47 = vector.multi_reduction <add>, %46, %cst_21 [0] : vector<2x8x128xf32> to vector<8x128xf32>
    %48 = arith.addf %44, %47 : vector<8x128xf32>
    %c1_22 = arith.constant 1 : index
    %c0_23 = arith.constant 0 : index
    %c0_24 = arith.constant 0 : index
    %49 = vector.load %arg5[%c1_22, %c0_23, %c0_24] : memref<3x8x128xf32, #tpu.memory_space<vmem>>, vector<1x8x128xf32>
    %50 = vector.shape_cast %49 : vector<1x8x128xf32> to vector<8x128xf32>
    %51 = vector.shape_cast %48 : vector<8x128xf32> to vector<1x8x128xf32>
    tpu.vector_store %arg5[%c1_22, %c0_23, %c0_24], %51 {strides = array<i32>} : memref<3x8x128xf32, #tpu.memory_space<vmem>>, vector<1x8x128xf32>,
    %c2 = arith.constant 2 : index
    %c0_25 = arith.constant 0 : index
    %c0_26 = arith.constant 0 : index
    %52 = vector.load %arg5[%c2, %c0_25, %c0_26] : memref<3x8x128xf32, #tpu.memory_space<vmem>>, vector<1x8x128xf32>
    %53 = vector.shape_cast %52 : vector<1x8x128xf32> to vector<8x128xf32>
    %54 = arith.addf %25, %5 : vector<16x128xf32>
    %55 = vector.shape_cast %54 : vector<16x128xf32> to vector<2x8x128xf32>
    %cst_27 = arith.constant dense<0.000000e+00> : vector<8x128xf32>
    %56 = vector.multi_reduction <add>, %55, %cst_27 [0] : vector<2x8x128xf32> to vector<8x128xf32>
    %57 = arith.addf %53, %56 : vector<8x128xf32>
    %c2_28 = arith.constant 2 : index
    %c0_29 = arith.constant 0 : index
    %c0_30 = arith.constant 0 : index
    %58 = vector.load %arg5[%c2_28, %c0_29, %c0_30] : memref<3x8x128xf32, #tpu.memory_space<vmem>>, vector<1x8x128xf32>
    %59 = vector.shape_cast %58 : vector<1x8x128xf32> to vector<8x128xf32>
    %60 = vector.shape_cast %57 : vector<8x128xf32> to vector<1x8x128xf32>
    tpu.vector_store %arg5[%c2_28, %c0_29, %c0_30], %60 {strides = array<i32>} : memref<3x8x128xf32, #tpu.memory_space<vmem>>, vector<1x8x128xf32>,
    %c0_i32_31 = arith.constant 0 : i32
    %61 = arith.cmpi eq, %arg1, %c0_i32_31 : i32
    %62 = arith.extui %61 : i1 to i32
    %c0_i32_32 = arith.constant 0 : i32
    %63 = arith.cmpi ne, %62, %c0_i32_32 : i32
    scf.if %63 {
      %c0_33 = arith.constant 0 : index
      %c0_34 = arith.constant 0 : index
      %c0_35 = arith.constant 0 : index
      %64 = vector.load %arg5[%c0_33, %c0_34, %c0_35] : memref<3x8x128xf32, #tpu.memory_space<vmem>>, vector<3x8x128xf32>
      %c0_36 = arith.constant 0 : index
      %c0_37 = arith.constant 0 : index
      %c0_38 = arith.constant 0 : index
      %65 = vector.load %arg4[%c0_36, %c0_37, %c0_38] : memref<3x8x128xf32, #tpu.memory_space<vmem>>, vector<3x8x128xf32>
      tpu.vector_store %arg4[%c0_36, %c0_37, %c0_38], %64 {strides = array<i32>} : memref<3x8x128xf32, #tpu.memory_space<vmem>>, vector<3x8x128xf32>,
    } else {
    }
    return
  }
  func.func @transform_0(%arg0: i32, %arg1: i32) -> (i32, i32) {
    %c1_i32 = arith.constant 1 : i32
    %0 = arith.muli %arg0, %c1_i32 : i32
    %1 = arith.addi %0, %arg1 : i32
    %c0_i32 = arith.constant 0 : i32
    %2 = arith.minsi %1, %c0_i32 : i32
    %c0_i32_0 = arith.constant 0 : i32
    %c0_i32_1 = arith.constant 0 : i32
    return %2, %c0_i32_0 : i32, i32
  }
  func.func @transform_1(%arg0: i32, %arg1: i32) -> (i32, i32) {
    %c1_i32 = arith.constant 1 : i32
    %0 = arith.muli %arg0, %c1_i32 : i32
    %1 = arith.addi %0, %arg1 : i32
    %c0_i32 = arith.constant 0 : i32
    %2 = arith.minsi %1, %c0_i32 : i32
    %c0_i32_0 = arith.constant 0 : i32
    %c0_i32_1 = arith.constant 0 : i32
    return %2, %c0_i32_0 : i32, i32
  }
  func.func @transform_2(%arg0: i32, %arg1: i32) -> (i32, i32, i32) {
    %c0_i32 = arith.constant 0 : i32
    %c0_i32_0 = arith.constant 0 : i32
    %c0_i32_1 = arith.constant 0 : i32
    return %arg0, %c0_i32, %c0_i32_0 : i32, i32, i32
  }
}

</mosaic_0001>

<bundles_post_ra>
// kernel: tpu_custom_call.1
= control target key start
LH: loop header
LB: loop body
LE: loop exit
PB: predicated region body
PF: predicated region fallthrough
CT: control target
= control target key end

     0   :  { %7 = vsyncpa [#allocation4], 0  ;;  %s321_s0 = inlined_call_operand.hbm [shape: f32[16,128], index: 0, kind: input, shape index: {}]   ;;  %s322_s1 = inlined_call_operand.hbm [shape: bf16[16,128], index: 1, kind: input, shape index: {}]   ;;  %s323_s2 = inlined_call_operand.hbm [shape: f32[3,8,128], index: 2, kind: output, shape index: {}]  }
   0x1   :  { %8 = vsyncpa [#allocation7], 0 }
   0x2   :  { %9 = vsyncpa [#allocation5], 0  ;;  %s257_s9 = smov [#allocation3]   ;;  %s185_s13 = scalar_lea.hbm %s321_s0, 256 }
   0x3   :  { %s21_s10 = sshll.u32 %s257_s9, 4  ;;  %p186_p0 = scmp.ne.s32.totalorder %s321_s0, %s185_s13  ;;  %s22_s10 = int_to_ptr.vmem [resolvable:$true] %s21_s10 }
   0x4   :  { %p189_p1 = scmp.lt.u32.totalorder %s185_s13, %s321_s0 }
   0x6   :  { %p191_p2 = pnand %p189_p1, %p186_p0 }
   0x8   :  { %194 = shalt.err (!%p191_p2)
}
   0x9   :  { %s195_s18 = scalar_lea.vmem %s22_s10, 256  ;;  %p200_p4 = scmp.lt.s32.totalorder %s22_s10, %s22_s10 }
   0xa   :  { %p196_p3 = scmp.ne.s32.totalorder %s22_s10, %s195_s18  ;;  %p201_p5 = scmp.lt.s32.totalorder %s195_s18, %s195_s18 }
   0xc   :  { %p202_p6 = por %p201_p5, %p200_p4 }
   0xe   :  { %p203_p7 = pnand %p202_p6, %p196_p3 }
  0x10   :  { %206 = shalt.err (!%p203_p7)
}
  0x11   :  { %s258_s19 = smov 128   ;;  %s259_s20 = smov 8  }
  0x12   :  { %27 = dma.hbm_to_vmem [thread:$0]  %s321_s0, 256, %s22_s10, [#allocation4], %s258_s19, %s258_s19, %s259_s20  }
  0x13   :  { %s260_s23 = smov [#allocation6]   ;;  %s207_s27 = scalar_lea.hbm %s322_s1, 128 }
  0x14   :  { %s39_s24 = sshll.u32 %s260_s23, 4  ;;  %p208_p8 = scmp.ne.s32.totalorder %s322_s1, %s207_s27  ;;  %s40_s24 = int_to_ptr.vmem [resolvable:$true] %s39_s24 }
  0x15   :  { %p211_p9 = scmp.lt.u32.totalorder %s207_s27, %s322_s1 }
  0x17   :  { %p213_p10 = pnand %p211_p9, %p208_p8 }
  0x19   :  { %216 = shalt.err (!%p213_p10)
}
  0x1a   :  { %s217_s4 = scalar_lea.vmem %s40_s24, 128  ;;  %p222_p12 = scmp.lt.s32.totalorder %s40_s24, %s40_s24 }
  0x1b   :  { %p218_p11 = scmp.ne.s32.totalorder %s40_s24, %s217_s4  ;;  %p223_p13 = scmp.lt.s32.totalorder %s217_s4, %s217_s4 }
  0x1d   :  { %p224_p0 = por %p223_p13, %p222_p12 }
  0x1f   :  { %p225_p1 = pnand %p224_p0, %p218_p11 }
  0x21   :  { %228 = shalt.err (!%p225_p1)
}
  0x22   :  { %s261_s0 = smov 64   ;;  %s262_s5 = smov 4  }
  0x23   :  { %45 = dma.hbm_to_vmem [thread:$0]  %s322_s1, 128, %s40_s24, [#allocation7], %s261_s0, %s261_s0, %s262_s5  }
  0x24   :  { %251 = dma.done.wait [#allocation4], 256  }
  0x25   :  { %252 = vsyncadd [#allocation4], 4294967040 }
  0x26   :  { %253 = dma.done.wait [#allocation7], 128  }
  0x27   :  { %254 = vsyncadd [#allocation7], 4294967168  ;;  %v67_v0 = vld [vmem:[#allocation3] sm:$0xff]  ;;  %v68_v1 = vld [vmem:[#allocation3 + $0x8] sm:$0xff]  ;;  %s263_s1 = smov [#allocation8]  }
  0x28   :  { %v73_v2 = vand.u32 2147483647, %v67_v0  ;;  %v74_v3 = vand.u32 2147483647, %v68_v1  ;;  %v163_v12 = vld [vmem:[#allocation6] sm:$0xff]   ;;  %vm97_vm0 = vcmp.ge.f32.partialorder %v67_v0, 0.0 }
  0x29   :  { %vm98_vm1 = vcmp.ge.f32.partialorder %v68_v1, 0.0  ;;  %v164_v13 = vunpack.c.l.bf16 %v163_v12  ;;  %v165_v14 = vunpack.c.h.bf16 %v163_v12  ;;  %v85_v19 = vmax.f32 %v67_v0, 0.0  ;;  %s145_s8 = sshll.u32 %s263_s1, 4  ;;  %s146_s8 = int_to_ptr.vmem [resolvable:$true] %s145_s8 }
  0x2a   :  { %v75_v4 = vsub.f32 0.0, %v73_v2  ;;  %v76_v5 = vsub.f32 0.0, %v74_v3  ;;  %v86_v20 = vmax.f32 %v68_v1, 0.0  ;;  %s229_s9 = scalar_lea.vmem %s146_s8, 384  ;;  %p234_p3 = scmp.lt.s32.totalorder %s146_s8, %s146_s8 }
  0x2b   :  { %v93_v21 = vmul.f32 %v164_v13, %v67_v0  ;;  %v94_v24 = vmul.f32 %v165_v14, %v68_v1  ;;  %vm103_vm2 = vcmp.gt.f32.partialorder %v164_v13, 0.5  ;;  %vm104_vm3 = vcmp.gt.f32.partialorder %v165_v14, 0.5  ;;  %p230_p2 = scmp.ne.s32.totalorder %s146_s8, %s229_s9  ;;  %p235_p4 = scmp.lt.s32.totalorder %s229_s9, %s229_s9 }
  0x2c   :  { %v77_v6 = vmul.f32 1.442695, %v75_v4  ;;  %v79_v7 = vmul.f32 1.442695, %v76_v5 }
  0x2d   :  { %p236_p5 = por %p235_p4, %p234_p3 }
  0x2e   :  { %173 = vpow2.f32 %v77_v6 }
  0x2f   :  { %175 = vpow2.f32 %v79_v7  ;;  %p237_p6 = pnand %p236_p5, %p230_p2 }
  0x38   :  { %v174_v8 = vpop.eup %173 }
  0x39   :  { %v176_v9 = vpop.eup %175  ;;  %v81_v10 = vadd.f32 1.0, %v174_v8  ;;  %v99_v15 = vsel %vm97_vm0, 1.0, %v174_v8 }
  0x3a   :  { %v82_v11 = vadd.f32 1.0, %v176_v9  ;;  %v100_v16 = vsel %vm98_vm1, 1.0, %v176_v9 }
  0x3b   :  { %177 = vrcp.f32 %v81_v10 }
  0x3c   :  { %179 = vrcp.f32 %v82_v11 }
  0x3d   :  { %181 = vlog2.f32 %v81_v10 }
  0x3e   :  { %183 = vlog2.f32 %v82_v11 }
  0x45   :  { %v178_v17 = vpop.eup %177 }
  0x46   :  { %v180_v18 = vpop.eup %179  ;;  %v101_v22 = vmul.f32 %v178_v17, %v99_v15 }
  0x47   :  { %v182_v23 = vpop.eup %181  ;;  %v102_v25 = vmul.f32 %v180_v18, %v100_v16 }
  0x48   :  { %v184_v26 = vpop.eup %183  ;;  %v88_v27 = vmul.f32 0.6931472, %v182_v23  ;;  %v105_v28 = vsub.f32 1.0, %v101_v22  ;;  %v119_v29 = vmul.f32 %v164_v13, %v101_v22  ;;  %v126_v30 = vadd.f32 %v164_v13, %v101_v22 }
  0x49   :  { %v90_v31 = vmul.f32 0.6931472, %v184_v26  ;;  %v106_v32 = vsub.f32 1.0, %v102_v25  ;;  %v120_v33 = vmul.f32 %v165_v14, %v102_v25  ;;  %v127_v34 = vadd.f32 %v165_v14, %v102_v25 }
  0x4a   :  { %v91_v35 = vadd.f32 %v88_v27, %v85_v19  ;;  %v107_v36 = vsel %vm103_vm2, %v105_v28, %v101_v22 }
  0x4b   :  { %v92_v37 = vadd.f32 %v90_v31, %v86_v20  ;;  %v108_v38 = vsel %vm104_vm3, %v106_v32, %v102_v25  ;;  %v109_v39 = vmul.f32 %v107_v36, %v107_v36  ;;  %v121_v40 = vadd.f32 %v120_v33, %v119_v29 }
  0x4c   :  { %v95_v41 = vsub.f32 %v91_v35, %v93_v21  ;;  %v110_v42 = vmul.f32 %v108_v38, %v108_v38  ;;  %v128_v43 = vadd.f32 %v127_v34, %v126_v30 }
  0x4d   :  { %v96_v44 = vsub.f32 %v92_v37, %v94_v24  ;;  %138 = vst [vmem:[#allocation8 + $0x8] sm:$0xff] %v121_v40 }
  0x4e   :  { %v111_v45 = vmul.f32 %v109_v39, %v95_v41  ;;  %139 = vst [vmem:[#allocation8 + $0x10] sm:$0xff] %v128_v43 }
  0x4f   :  { %v112_v46 = vmul.f32 %v110_v42, %v96_v44 }
  0x51   :  { %v114_v47 = vadd.f32 %v112_v46, %v111_v45 }
  0x53   :  { %137 = vst [vmem:[#allocation8] sm:$0xff] %v114_v47 }
  0x54   :  { %240 = shalt.err (!%p237_p6)
}
  0x55   :  { %s241_s12 = scalar_lea.hbm %s323_s2, 384 }
  0x56   :  { %p242_p7 = scmp.ne.s32.totalorder %s323_s2, %s241_s12  ;;  %p245_p8 = scmp.lt.u32.totalorder %s241_s12, %s323_s2 }
  0x58   :  { %p247_p9 = pnand %p245_p8, %p242_p7 }
  0x5a   :  { %250 = shalt.err (!%p247_p9)
}
  0x5b   :  { %151 = dma.vmem_to_hbm [thread:$0]  %s146_s8, 384, %s323_s2, [#allocation5], %s258_s19, %s258_s19, %s259_s20  }
  0x5c   :  { %255 = dma.done.wait [#allocation5], 384  }
  0x5d   :  { %256 = vsyncadd [#allocation5], 4294966912 }
  0x5e   :  { %155 = vsyncpa [#allocation4], 1 }
  0x5f   :  { %156 = vsyncpa [#allocation7], 1 }
  0x60   :  { %157 = vsyncpa [#allocation5], 1 }

</bundles_post_ra>
